<compile_context>
chip_gen: v5e
topology: v5e:2x2
jax: 0.10.0
libtpu: 0.0.40
codegen_flags: <defaults>
</compile_context>

<pallas_src>
import functools

import jax
import jax.numpy as jnp
from jax.experimental import pallas as pl
from jax.experimental.pallas import tpu as pltpu


def _round_up(x: int, m: int) -> int:
    return (x + m - 1) // m * m


def _choose_batch_tile(B: int, batch_tile: int):
    """Pick (TB, num_tiles, B_pad).

    - TB is a multiple of 8 sublanes, at most `batch_tile`.
    - If the batch is large enough, force >= 2 tiles so v7x's two TensorCores
      both get work under dimension_semantics=("parallel",).
    - TB is trimmed toward ceil(B / num_tiles) to minimise phantom padded rows.
    """
    TB = min(_round_up(max(batch_tile, 8), 8), _round_up(B, 8))
    num_tiles = pl.cdiv(B, TB)
    if num_tiles == 1 and B >= 128:
        num_tiles = 2  # let v7x megacore split the batch
    TB = min(TB, _round_up(pl.cdiv(B, num_tiles), 8))
    num_tiles = pl.cdiv(B, TB)
    return TB, num_tiles, num_tiles * TB


def dqn_mlp_kernel(x_ref, w1_ref, b1_ref, w2_ref, b2_ref, w3_ref, b3_ref, out_ref):
    # Hidden layer 1: ReLU(x @ W1 + b1) -- MXU matmul, f32 accumulation,
    # f32 bias-add/ReLU epilogue (safe on v5e even when inputs are bf16).
    h1 = jnp.dot(x_ref[...], w1_ref[...], preferred_element_type=jnp.float32)
    h1 = jnp.maximum(h1 + b1_ref[...], 0.0)
    # Hidden layer 2: ReLU(h1 @ W2 + b2)
    h2 = jnp.dot(h1.astype(w2_ref.dtype), w2_ref[...], preferred_element_type=jnp.float32)
    h2 = jnp.maximum(h2 + b2_ref[...], 0.0)
    # Output layer: h2 @ W3 + b3  (no activation, matches the PyTorch forward)
    o = jnp.dot(h2.astype(w3_ref.dtype), w3_ref[...], preferred_element_type=jnp.float32)
    out_ref[...] = (o + b3_ref[...]).astype(out_ref.dtype)


def dqn_forward(x, w1, b1, w2, b2, w3, b3, *, batch_tile=512):
    """x: (B, I); w*: (in, out); b*: (1, out) f32.  Returns (B, O) f32.

    The MXU input dtype follows the weights' dtype (pre-cast params once with
    cast_params_for_mxu for the bf16 mem-bound path); accumulation, bias-add
    and ReLU always run in f32.
    """
    B, I = x.shape
    H1 = w1.shape[1]
    H2 = w2.shape[1]
    O = w3.shape[1]
    f32 = jnp.float32

    mm_dtype = w1.dtype
    if x.dtype != mm_dtype:
        x = x.astype(mm_dtype)

    TB, num_tiles, B_p = _choose_batch_tile(B, batch_tile)
    if B_p != B:
        x = jnp.pad(x, ((0, B_p - B), (0, 0)))

    # ---- VMEM footprint / scaled-config handling (v7x: 64 MiB physical) ----
    itemsize = jnp.dtype(mm_dtype).itemsize
    weight_bytes = (I * H1 + H1 * H2 + H2 * O) * itemsize + (H1 + H2 + O) * 4
    tile_io_bytes = TB * (I * itemsize + O * 4)     # one x tile + one out tile
    act_bytes = TB * (H1 + H2) * 4                  # f32 h1/h2 temporaries
    # Resident weights never change across the grid -> one buffer suffices
    # once they get big (quarters footprint together with bf16 on v7x).
    single_buffer_weights = weight_bytes > (8 << 20)
    weight_bufs = 1 if single_buffer_weights else 2
    vmem_needed = weight_bufs * weight_bytes + 2 * tile_io_bytes + 2 * act_bytes

    compiler_kwargs = dict(dimension_semantics=("parallel",))
    if vmem_needed > (28 << 20):
        compiler_kwargs["vmem_limit_bytes"] = int(min(vmem_needed * 5 // 4, 100 << 20))
    # TODO(synk): for MXU-bound scaled configs (hidden >= ~512, large TB) on
    # v6e/v7x, pad H1/H2 to multiples of 256 and use bf16 weights to fill both
    # 256-wide MXU columns; irrelevant at the 32-wide default config.

    def batch_spec(cols):
        return pl.BlockSpec((TB, cols), lambda i: (i, 0))

    def resident_spec(shape):
        # Constant block index -> weight/bias stays in VMEM across the grid.
        if single_buffer_weights:
            return pl.BlockSpec(shape, lambda i: (0, 0), pipeline_mode=pl.Buffered(1))
        return pl.BlockSpec(shape, lambda i: (0, 0))

    cost = pl.CostEstimate(
        flops=2 * B_p * (I * H1 + H1 * H2 + H2 * O),
        transcendentals=0,
        bytes_accessed=int(B_p * I * itemsize + weight_bytes + B_p * O * 4),
    )

    out_p = pl.pallas_call(
        dqn_mlp_kernel,
        out_shape=jax.ShapeDtypeStruct((B_p, O), f32),
        grid_spec=pltpu.PrefetchScalarGridSpec(
            num_scalar_prefetch=0,
            grid=(num_tiles,),
            in_specs=[
                batch_spec(I),
                resident_spec((I, H1)),
                resident_spec((1, H1)),
                resident_spec((H1, H2)),
                resident_spec((1, H2)),
                resident_spec((H2, O)),
                resident_spec((1, O)),
            ],
            out_specs=batch_spec(O),
        ),
        compiler_params=pltpu.CompilerParams(**compiler_kwargs),
        cost_estimate=cost,
    )(x, w1, b1, w2, b2, w3, b3)

    return out_p[:B] if B_p != B else out_p


def cast_params_for_mxu(w1, b1, w2, b2, w3, b3, mxu_dtype=jnp.bfloat16):
    """Pre-cast weights ONCE (e.g. after each optimizer step) for the mem-bound
    bf16 inference path; biases stay f32 for the f32 bias/ReLU epilogue.
    NOTE: bf16 results diverge from the f32 PyTorch reference beyond ~1e-5."""
    return (w1.astype(mxu_dtype), b1.astype(jnp.float32),
            w2.astype(mxu_dtype), b2.astype(jnp.float32),
            w3.astype(mxu_dtype), b3.astype(jnp.float32))


def init_dqn_params(key, input_size, hidden_size, output_size):
    """Deterministic init mirroring nn.Linear shapes (weights stored transposed)."""
    ks = jax.random.split(key, 6)

    def linear_params(kw, kb, fan_in, fan_out):
        bound = 1.0 / jnp.sqrt(jnp.float32(fan_in))
        # PyTorch weight is (out, in); we store (in, out) = W.T for the kernel.
        w = jax.random.uniform(kw, (fan_in, fan_out), jnp.float32, -bound, bound)
        b = jax.random.uniform(kb, (1, fan_out), jnp.float32, -bound, bound)
        return w, b

    w1, b1 = linear_params(ks[0], ks[1], input_size, hidden_size)
    w2, b2 = linear_params(ks[2], ks[3], hidden_size, hidden_size)
    w3, b3 = linear_params(ks[4], ks[5], hidden_size, output_size)
    return w1, b1, w2, b2, w3, b3


if __name__ == "__main__":
    # Small shapes consistent with the module: DQN(input_size=16, hidden=32, output=4)
    batch, input_size, hidden_size, output_size = 8, 16, 32, 4

    key = jax.random.PRNGKey(0)
    kx, kx2, kp = jax.random.split(key, 3)
    x = jax.random.normal(kx, (batch, input_size), dtype=jnp.float32)
    w1, b1, w2, b2, w3, b3 = init_dqn_params(kp, input_size, hidden_size, output_size)

    def ref_fwd(xx):
        h1 = jnp.maximum(xx @ w1 + b1, 0.0)
        h2 = jnp.maximum(h1 @ w2 + b2, 0.0)
        return h2 @ w3 + b3

    # --- check 1: single-tile path ---
    fwd = jax.jit(functools.partial(dqn_forward, batch_tile=512))
    out = jax.block_until_ready(fwd(x, w1, b1, w2, b2, w3, b3))
    assert out.shape == (batch, output_size)
    assert jnp.allclose(out, ref_fwd(x), atol=1e-5, rtol=1e-5)

    # --- check 2: multi-tile grid + batch padding (B=136, batch_tile=64 -> 3x48) ---
    x2 = jax.random.normal(kx2, (136, input_size), dtype=jnp.float32)
    fwd2 = jax.jit(functools.partial(dqn_forward, batch_tile=64))
    out2 = jax.block_until_ready(fwd2(x2, w1, b1, w2, b2, w3, b3))
    assert out2.shape == (136, output_size)
    assert jnp.allclose(out2, ref_fwd(x2), atol=1e-5, rtol=1e-5)

    print("KERNEL_OK")
</pallas_src>

<mosaic_0001>
module attributes {stable_mosaic.version = 11 : i64} {
  func.func @dqn_mlp_kernel(%arg0: i32, %arg1: memref<8x16xf32, #tpu.memory_space<vmem>>, %arg2: memref<16x32xf32, #tpu.memory_space<vmem>>, %arg3: memref<1x32xf32, #tpu.memory_space<vmem>>, %arg4: memref<32x32xf32, #tpu.memory_space<vmem>>, %arg5: memref<1x32xf32, #tpu.memory_space<vmem>>, %arg6: memref<32x4xf32, #tpu.memory_space<vmem>>, %arg7: memref<1x4xf32, #tpu.memory_space<vmem>>, %arg8: memref<8x4xf32, #tpu.memory_space<vmem>>) attributes {dimension_semantics = [#tpu.dimension_semantics<parallel>], iteration_bounds = array<i64: 1>, scalar_prefetch = 0 : i64, scratch_operands = 0 : i64, tpu.core_type = #tpu.core_type<tc>, window_params = [{transform_indices = @transform_0, window_bounds = array<i64: 8, 16>}, {pipeline_mode = #tpu.pipeline_mode<synchronous>, transform_indices = @transform_1, window_bounds = array<i64: 16, 32>}, {pipeline_mode = #tpu.pipeline_mode<synchronous>, transform_indices = @transform_2, window_bounds = array<i64: 1, 32>}, {pipeline_mode = #tpu.pipeline_mode<synchronous>, transform_indices = @transform_3, window_bounds = array<i64: 32, 32>}, {pipeline_mode = #tpu.pipeline_mode<synchronous>, transform_indices = @transform_4, window_bounds = array<i64: 1, 32>}, {pipeline_mode = #tpu.pipeline_mode<synchronous>, transform_indices = @transform_5, window_bounds = array<i64: 32, 4>}, {pipeline_mode = #tpu.pipeline_mode<synchronous>, transform_indices = @transform_6, window_bounds = array<i64: 1, 4>}, {transform_indices = @transform_7, window_bounds = array<i64: 8, 4>}]} {
    %c0 = arith.constant 0 : index
    %c0_0 = arith.constant 0 : index
    %0 = vector.load %arg1[%c0, %c0_0] : memref<8x16xf32, #tpu.memory_space<vmem>>, vector<8x16xf32>
    %c0_1 = arith.constant 0 : index
    %c0_2 = arith.constant 0 : index
    %1 = vector.load %arg2[%c0_1, %c0_2] : memref<16x32xf32, #tpu.memory_space<vmem>>, vector<16x32xf32>
    %cst = arith.constant dense<0.000000e+00> : vector<8x32xf32>
    %2 = tpu.matmul %0, %1, %cst {dimension_numbers = #tpu.dot_dimension_numbers<[1], [0], [0], [1], [0, 0, 1, 1], [], []>} : vector<8x16xf32>, vector<16x32xf32>, vector<8x32xf32> -> vector<8x32xf32>
    %c0_3 = arith.constant 0 : index
    %c0_4 = arith.constant 0 : index
    %3 = vector.load %arg3[%c0_3, %c0_4] : memref<1x32xf32, #tpu.memory_space<vmem>>, vector<1x32xf32>
    %4 = vector.broadcast %3 : vector<1x32xf32> to vector<8x32xf32>
    %5 = arith.addf %2, %4 : vector<8x32xf32>
    %cst_5 = arith.constant 0.000000e+00 : f32
    %6 = vector.broadcast %cst_5 : f32 to vector<8x32xf32>
    %7 = arith.maximumf %5, %6 : vector<8x32xf32>
    %c0_6 = arith.constant 0 : index
    %c0_7 = arith.constant 0 : index
    %8 = vector.load %arg4[%c0_6, %c0_7] : memref<32x32xf32, #tpu.memory_space<vmem>>, vector<32x32xf32>
    %cst_8 = arith.constant dense<0.000000e+00> : vector<8x32xf32>
    %9 = tpu.matmul %7, %8, %cst_8 {dimension_numbers = #tpu.dot_dimension_numbers<[1], [0], [0], [1], [0, 0, 1, 1], [], []>} : vector<8x32xf32>, vector<32x32xf32>, vector<8x32xf32> -> vector<8x32xf32>
    %c0_9 = arith.constant 0 : index
    %c0_10 = arith.constant 0 : index
    %10 = vector.load %arg5[%c0_9, %c0_10] : memref<1x32xf32, #tpu.memory_space<vmem>>, vector<1x32xf32>
    %11 = vector.broadcast %10 : vector<1x32xf32> to vector<8x32xf32>
    %12 = arith.addf %9, %11 : vector<8x32xf32>
    %cst_11 = arith.constant 0.000000e+00 : f32
    %13 = vector.broadcast %cst_11 : f32 to vector<8x32xf32>
    %14 = arith.maximumf %12, %13 : vector<8x32xf32>
    %c0_12 = arith.constant 0 : index
    %c0_13 = arith.constant 0 : index
    %15 = vector.load %arg6[%c0_12, %c0_13] : memref<32x4xf32, #tpu.memory_space<vmem>>, vector<32x4xf32>
    %cst_14 = arith.constant dense<0.000000e+00> : vector<8x4xf32>
    %16 = tpu.matmul %14, %15, %cst_14 {dimension_numbers = #tpu.dot_dimension_numbers<[1], [0], [0], [1], [0, 0, 1, 1], [], []>} : vector<8x32xf32>, vector<32x4xf32>, vector<8x4xf32> -> vector<8x4xf32>
    %c0_15 = arith.constant 0 : index
    %c0_16 = arith.constant 0 : index
    %17 = vector.load %arg7[%c0_15, %c0_16] : memref<1x4xf32, #tpu.memory_space<vmem>>, vector<1x4xf32>
    %18 = vector.broadcast %17 : vector<1x4xf32> to vector<8x4xf32>
    %19 = arith.addf %16, %18 : vector<8x4xf32>
    %c0_17 = arith.constant 0 : index
    %c0_18 = arith.constant 0 : index
    %20 = vector.load %arg8[%c0_17, %c0_18] : memref<8x4xf32, #tpu.memory_space<vmem>>, vector<8x4xf32>
    tpu.vector_store %arg8[%c0_17, %c0_18], %19 {strides = array<i32>} : memref<8x4xf32, #tpu.memory_space<vmem>>, vector<8x4xf32>,
    return
  }
  func.func @transform_0(%arg0: i32) -> (i32, i32) {
    %c0_i32 = arith.constant 0 : i32
    %c0_i32_0 = arith.constant 0 : i32
    return %arg0, %c0_i32 : i32, i32
  }
  func.func @transform_1(%arg0: i32) -> (i32, i32) {
    %c0_i32 = arith.constant 0 : i32
    %c0_i32_0 = arith.constant 0 : i32
    %c0_i32_1 = arith.constant 0 : i32
    return %c0_i32, %c0_i32_0 : i32, i32
  }
  func.func @transform_2(%arg0: i32) -> (i32, i32) {
    %c0_i32 = arith.constant 0 : i32
    %c0_i32_0 = arith.constant 0 : i32
    %c0_i32_1 = arith.constant 0 : i32
    return %c0_i32, %c0_i32_0 : i32, i32
  }
  func.func @transform_3(%arg0: i32) -> (i32, i32) {
    %c0_i32 = arith.constant 0 : i32
    %c0_i32_0 = arith.constant 0 : i32
    %c0_i32_1 = arith.constant 0 : i32
    return %c0_i32, %c0_i32_0 : i32, i32
  }
  func.func @transform_4(%arg0: i32) -> (i32, i32) {
    %c0_i32 = arith.constant 0 : i32
    %c0_i32_0 = arith.constant 0 : i32
    %c0_i32_1 = arith.constant 0 : i32
    return %c0_i32, %c0_i32_0 : i32, i32
  }
  func.func @transform_5(%arg0: i32) -> (i32, i32) {
    %c0_i32 = arith.constant 0 : i32
    %c0_i32_0 = arith.constant 0 : i32
    %c0_i32_1 = arith.constant 0 : i32
    return %c0_i32, %c0_i32_0 : i32, i32
  }
  func.func @transform_6(%arg0: i32) -> (i32, i32) {
    %c0_i32 = arith.constant 0 : i32
    %c0_i32_0 = arith.constant 0 : i32
    %c0_i32_1 = arith.constant 0 : i32
    return %c0_i32, %c0_i32_0 : i32, i32
  }
  func.func @transform_7(%arg0: i32) -> (i32, i32) {
    %c0_i32 = arith.constant 0 : i32
    %c0_i32_0 = arith.constant 0 : i32
    return %arg0, %c0_i32 : i32, i32
  }
}

</mosaic_0001>

<bundles_post_ra>
// kernel: dqn_forward.1
= control target key start
LH: loop header
LB: loop body
LE: loop exit
PB: predicated region body
PF: predicated region fallthrough
CT: control target
= control target key end

     0   :  { %12 = vsyncpa [#allocation3], 0  ;;  %s308_s0 = inlined_call_operand.hbm [shape: f32[8,16], index: 0, kind: input, shape index: {}]   ;;  %s309_s1 = inlined_call_operand.hbm [shape: f32[16,32], index: 1, kind: input, shape index: {}]   ;;  %s310_s2 = inlined_call_operand.vmem [shape: f32[1,32], index: 2, kind: input, shape index: {}]   ;;  %s311_s3 = inlined_call_operand.vmem [shape: f32[32,32], index: 3, kind: input, shape index: {}]   ;;  %s312_s4 = inlined_call_operand.vmem [shape: f32[1,32], index: 4, kind: input, shape index: {}]   ;;  %s313_s5 = inlined_call_operand.vmem [shape: f32[32,4], index: 5, kind: input, shape index: {}]   ;;  %s314_s6 = inlined_call_operand.vmem [shape: f32[1,4], index: 6, kind: input, shape index: {}]   ;;  %s315_s7 = inlined_call_operand.vmem [shape: f32[8,4], index: 7, kind: output, shape index: {}]  }
   0x1   :  { %s19_s26 = sshll.u32 %s308_s0, 4  ;;  %s20_s26 = int_to_ptr.hbm [resolvable:$true] %s19_s26 }
   0x2   :  { %13 = vsyncpa [#allocation5], 0  ;;  %s222_s27 = smov [#allocation2]   ;;  %s29_s8 = sshll.u32 %s309_s1, 4  ;;  %s30_s8 = int_to_ptr.hbm [resolvable:$true] %s29_s8 }
   0x3   :  { %s21_s28 = sshll.u32 %s222_s27, 4  ;;  %s223_s9 = smov [#allocation4]   ;;  %s22_s28 = int_to_ptr.vmem [resolvable:$true] %s21_s28 }
   0x4   :  { %24 = dma.hbm_to_vmem [thread:$0]  %s20_s26, 128, %s22_s28, [#allocation3]  }
   0x5   :  { %s31_s10 = sshll.u32 %s223_s9, 4  ;;  %s224_s11 = smov 128   ;;  %s32_s10 = int_to_ptr.vmem [resolvable:$true] %s31_s10 }
   0x6   :  { %s225_s12 = smov 8  }
   0x7   :  { %37 = dma.hbm_to_vmem [thread:$0]  %s30_s8, 256, %s32_s10, [#allocation5], %s224_s11, %s224_s11, %s225_s12  }
   0x8   :  { %218 = dma.done.wait [#allocation3], 128  }
   0x9   :  { %219 = vsyncadd [#allocation3], 4294967168 }
   0xa   :  { %220 = dma.done.wait [#allocation5], 256  }
   0xb   :  { %221 = vsyncadd [#allocation5], 4294967040  ;;  %v58_v0 = vld [vmem:[#allocation4 + $0x8] sm:$0xff]  ;;  %v57_v1 = vld [vmem:[#allocation4] sm:$0xff]  ;;  %vm63_vm0 = vcmask 130048   ;;  %vm96_vm1 = vcmask 261120  }
   0xc   :  { %81 = vmatpush.msra.mxu0 %v58_v0  ;;  %v56_v2 = vld [vmem:[#allocation2] sm:$0xff]  ;;  %v91_v3 = vld [vmem:[%s311_s3 + $0x18] sm:$0xff]  ;;  %v90_v4 = vld [vmem:[%s311_s3 + $0x10] sm:$0xff]  ;;  %vm152_vm2 = vcmask 31744  }
   0xd   :  { %112 = vmatpush.msra.mxu1 %v91_v3  ;;  %v89_v5 = vld [vmem:[%s311_s3 + $0x8] sm:$0xff]  ;;  %v88_v6 = vld [vmem:[%s311_s3] sm:$0xff]  ;;  %v124_v7 = vld [vmem:[%s313_s5 + $0x18] sm:$0xff] }
   0xe   :  { %82 = vmatpush.msra.mxu0 %v57_v1  ;;  %144 = vmatpush.msra.mxu2 %v124_v7  ;;  %v167_v8 = vld [vmem:[%s310_s2] ss:$0 sm:$0xff]  ;;  %v123_v12 = vld [vmem:[%s313_s5 + $0x10] sm:$0xff]  ;;  %v122_v13 = vld [vmem:[%s313_s5 + $0x8] sm:$0xff] }
   0xf   :  { %160 = vmatmul.msk.f32.vlgmr.msra.gmra.mxu0 %vm63_vm0, %v56_v2  ;;  %113 = vmatpush.msra.mxu1 %v90_v4  ;;  %v121_v14 = vld [vmem:[%s313_s5] sm:$0xff] }
  0x10   :  { %145 = vmatpush.msra.mxu2 %v123_v12  ;;  %v168_v15 = vld [vmem:[%s312_s4] ss:$0 sm:$0xff] }
  0x11   :  { %114 = vmatpush.msra.mxu1 %v89_v5  ;;  %v169_v19 = vld [vmem:[%s314_s6] ss:$0 sm:$0xff] }
  0x12   :  { %146 = vmatpush.msra.mxu2 %v122_v13 }
  0x13   :  { %115 = vmatpush.msra.mxu1 %v88_v6 }
  0x14   :  { %147 = vmatpush.msra.mxu2 %v121_v14 }
  0x8c   :  { %v84_v9 = vpop.f32.mrf.mxu0 }
  0x8d   :  { %v85_v10 = vadd.f32 %v167_v8, %v84_v9 }
  0x8f   :  { %v87_v11 = vmax.f32 %v85_v10, 0.0 }
  0x91   :  { %161 = vmatmul.msk.f32.vlgmr.msra.gmra.mxu1 %vm96_vm1, %v87_v11 }
 0x10e   :  { %v117_v16 = vpop.f32.mrf.mxu1 }
 0x10f   :  { %v118_v17 = vadd.f32 %v168_v15, %v117_v16 }
 0x111   :  { %v120_v18 = vmax.f32 %v118_v17, 0.0 }
 0x113   :  { %162 = vmatmul.msk.f32.vlgmr.msra.gmra.mxu2 %vm96_vm1, %v120_v18 }
 0x196   :  { %v149_v20 = vpop.f32.mrf.mxu2 }
 0x197   :  { %v150_v21 = vadd.f32 %v169_v19, %v149_v20 }
 0x199   :  { %153 = vst.msk [vmem:[%s315_s7] sm:$0xff] %vm152_vm2, %v150_v21 }
 0x19a   :  { %158 = vsyncpa [#allocation3], 1 }
 0x19b   :  { %159 = vsyncpa [#allocation5], 1 }

</bundles_post_ra>
